<compile_context>
chip_gen: v7x
topology: tpu7x:2x2x1
jax: 0.10.0
libtpu: 0.0.40
codegen_flags: <defaults>
</compile_context>

<pallas_src>
import functools

import jax
import jax.numpy as jnp
from jax.experimental import pallas as pl
from jax.experimental.pallas import tpu as pltpu

LANES = 128


def get_edge_feature_dims():
    return [5, 6, 2]


def _edge_encoder_kernel(idx_ref, tab_ref, out_ref, *, groups):
    """One-hot of pre-positioned combined indices x block-diagonal table on the MXU."""
    idx = idx_ref[...]                      # (tile_rows, G) int32, values in [g*K0, g*K0+60)
    tab = tab_ref[...]                      # (G*K0, G*D) f32, block-diagonal, resident
    rows = idx.shape[0]
    k = tab.shape[0]
    k_iota = jax.lax.broadcasted_iota(jnp.int32, (rows, k), 1)
    onehot = idx[:, 0:1] == k_iota          # group 0 hit
    for g in range(1, groups):              # groups have disjoint [g*K0, (g+1)*K0) ranges
        onehot = onehot | (idx[:, g:g + 1] == k_iota)
    # Single fused MXU matmul, written straight to the lane-dense output block.
    out_ref[...] = jnp.dot(onehot.astype(jnp.float32), tab,
                           preferred_element_type=jnp.float32)


def edge_encoder(edge_attr, emb_tables, *, tile_rows=2048):
    """edge_attr: (E, 3) int; emb_tables: list of (dim_i, emb_dim) f32. Returns (E, emb_dim) f32."""
    E, F = edge_attr.shape
    D = int(emb_tables[0].shape[1])
    dims = [int(t.shape[0]) for t in emb_tables]
    assert F == len(dims)

    # Edges packed per 128-lane output row (4 for emb_dim=32).
    G = LANES // D if (D <= LANES and LANES % D == 0) else 1

    # ---- wrapper-side (trace-time) table fusion ------------------------------
    # comb[c] = sum_i emb_tables[i][i_i]  with  c = ((i0 * n1) + i1) * n2 + i2.
    comb = emb_tables[0].astype(jnp.float32)
    for t in emb_tables[1:]:
        comb = (comb[:, None, :] + t[None, :, :].astype(jnp.float32)).reshape(-1, D)
    n_comb = comb.shape[0]                                # 60
    K0 = max(8, -(-n_comb // 8) * 8)                      # pad rows to sublane multiple (64)
    if K0 > n_comb:
        comb = jnp.concatenate([comb, jnp.zeros((K0 - n_comb, D), jnp.float32)], axis=0)
    # Block-diagonal so G edges share one lane-dense 128-wide output row.
    table = jnp.kron(jnp.eye(G, dtype=jnp.float32), comb)  # (G*K0, G*D) = (256, 128)
    KT, DT = table.shape

    # ---- wrapper-side combined / positioned indices ---------------------------
    ea = edge_attr.astype(jnp.int32)
    # Clamp: nn.Embedding faults on OOB; an OOB combined index here would silently
    # select a wrong/zero row, so clamp instead (review correctness note).
    cols = [jnp.clip(ea[:, i], 0, dims[i] - 1) for i in range(F)]
    c = cols[0]
    for i in range(1, F):
        c = c * dims[i] + cols[i]                          # (E,) in [0, n_comb)
    E_pad = -(-E // G) * G
    if E_pad > E:
        c = jnp.concatenate([c, jnp.zeros((E_pad - E,), jnp.int32)], axis=0)
    R = E_pad // G
    idx = c.reshape(R, G) + (jnp.arange(G, dtype=jnp.int32) * K0)[None, :]
    # TODO(synk): further index densification (e.g. 4x8-bit packed per int32 lane)
    # would shave the remaining lane-padded idx DMA; left as-is per review's
    # suggested (E//4, 4) layout.

    # ---- tile selection --------------------------------------------------------
    if R > 64:
        # Keep >= ~4 grid steps so both v7x TensorCores get work; 8-aligned tiles.
        tr = min(tile_rows, max(64, pl.cdiv(R, 4)))
        tr = max(8, (tr // 8) * 8)
    else:
        tr = R                                             # single whole-array tile
    grid_r = pl.cdiv(R, tr)

    out = pl.pallas_call(
        functools.partial(_edge_encoder_kernel, groups=G),
        out_shape=jax.ShapeDtypeStruct((R, DT), jnp.float32),
        grid=(grid_r,),
        in_specs=[
            pl.BlockSpec((tr, G), lambda i: (i, 0)),       # tiled packed indices
            pl.BlockSpec((KT, DT), lambda i: (0, 0)),      # table: constant map, resident
        ],
        out_specs=pl.BlockSpec((tr, DT), lambda i: (i, 0)),
        compiler_params=pltpu.CompilerParams(
            dimension_semantics=("parallel",)),
    )(idx, table)

    # Row-major unpacking back to (E, emb_dim).
    return out.reshape(E_pad, D)[:E]


def xavier_uniform(key, shape, dtype=jnp.float32):
    # torch.nn.init.xavier_uniform_ on a [num_emb, emb_dim] weight:
    fan_out, fan_in = shape
    bound = jnp.sqrt(6.0 / (fan_in + fan_out))
    return jax.random.uniform(key, shape, dtype, minval=-bound, maxval=bound)


if __name__ == "__main__":
    emb_dim = 32
    dims = get_edge_feature_dims()            # [5, 6, 2]

    key = jax.random.PRNGKey(0)
    keys = jax.random.split(key, len(dims) + 1)

    # Deterministic parameter init (synthetic, not a checkpoint load).
    emb_tables = [xavier_uniform(keys[i], (d, emb_dim)) for i, d in enumerate(dims)]

    def make_edge_attr(k, E):
        col_keys = jax.random.split(k, len(dims))
        cols = [jax.random.randint(col_keys[i], (E, 1), 0, d, dtype=jnp.int32)
                for i, d in enumerate(dims)]
        return jnp.concatenate(cols, axis=1)   # (E, 3) int32

    def reference(edge_attr):
        return sum(jnp.take(emb_tables[i], edge_attr[:, i], axis=0)
                   for i in range(len(dims)))

    # Small case (single tile, E multiple of the 4-edge packing).
    ea_small = make_edge_attr(keys[-1], 8)
    out_small = jax.block_until_ready(edge_encoder(ea_small, emb_tables))
    assert out_small.shape == (8, emb_dim)
    assert jnp.allclose(out_small, reference(ea_small), atol=1e-5, rtol=1e-5)

    # Multi-tile case: E not a multiple of 4 (exercises edge padding) and a
    # partial last tile (exercises grid pipelining + masked writeback).
    ea_big = make_edge_attr(jax.random.fold_in(keys[-1], 1), 1001)
    out_big = jax.block_until_ready(edge_encoder(ea_big, emb_tables, tile_rows=64))
    assert out_big.shape == (1001, emb_dim)
    assert jnp.allclose(out_big, reference(ea_big), atol=1e-5, rtol=1e-5)

    print("KERNEL_OK")
</pallas_src>

<mosaic_0001>
module attributes {stable_mosaic.version = 11 : i64} {
  func.func @_edge_encoder_kernel(%arg0: i32, %arg1: memref<2x4xi32, #tpu.memory_space<vmem>>, %arg2: memref<256x128xf32, #tpu.memory_space<vmem>>, %arg3: memref<2x128xf32, #tpu.memory_space<vmem>>) attributes {dimension_semantics = [#tpu.dimension_semantics<parallel>], iteration_bounds = array<i64: 1>, scalar_prefetch = 0 : i64, scratch_operands = 0 : i64, tpu.core_type = #tpu.core_type<tc>, window_params = [{transform_indices = @transform_0, window_bounds = array<i64: 2, 4>}, {pipeline_mode = #tpu.pipeline_mode<synchronous>, transform_indices = @transform_1, window_bounds = array<i64: 256, 128>}, {transform_indices = @transform_2, window_bounds = array<i64: 2, 128>}]} {
    %c0 = arith.constant 0 : index
    %c0_0 = arith.constant 0 : index
    %0 = vector.load %arg1[%c0, %c0_0] : memref<2x4xi32, #tpu.memory_space<vmem>>, vector<2x4xi32>
    %c0_1 = arith.constant 0 : index
    %c0_2 = arith.constant 0 : index
    %1 = vector.load %arg2[%c0_1, %c0_2] : memref<256x128xf32, #tpu.memory_space<vmem>>, vector<256x128xf32>
    %2 = tpu.iota {dimensions = array<i32: 1>} : vector<2x256xi32>
    %3 = vector.extract_strided_slice %0 {offsets = [0, 0], sizes = [2, 1], strides = [1, 1]} : vector<2x4xi32> to vector<2x1xi32>
    %4 = vector.broadcast %3 : vector<2x1xi32> to vector<2x256xi32>
    %5 = arith.cmpi eq, %4, %2 : vector<2x256xi32>
    %6 = vector.extract_strided_slice %0 {offsets = [0, 1], sizes = [2, 1], strides = [1, 1]} : vector<2x4xi32> to vector<2x1xi32>
    %7 = vector.broadcast %6 : vector<2x1xi32> to vector<2x256xi32>
    %8 = arith.cmpi eq, %7, %2 : vector<2x256xi32>
    %9 = arith.ori %5, %8 : vector<2x256xi1>
    %10 = vector.extract_strided_slice %0 {offsets = [0, 2], sizes = [2, 1], strides = [1, 1]} : vector<2x4xi32> to vector<2x1xi32>
    %11 = vector.broadcast %10 : vector<2x1xi32> to vector<2x256xi32>
    %12 = arith.cmpi eq, %11, %2 : vector<2x256xi32>
    %13 = arith.ori %9, %12 : vector<2x256xi1>
    %14 = vector.extract_strided_slice %0 {offsets = [0, 3], sizes = [2, 1], strides = [1, 1]} : vector<2x4xi32> to vector<2x1xi32>
    %15 = vector.broadcast %14 : vector<2x1xi32> to vector<2x256xi32>
    %16 = arith.cmpi eq, %15, %2 : vector<2x256xi32>
    %17 = arith.ori %13, %16 : vector<2x256xi1>
    %18 = arith.extui %17 : vector<2x256xi1> to vector<2x256xi32>
    %19 = arith.sitofp %18 : vector<2x256xi32> to vector<2x256xf32>
    %cst = arith.constant dense<0.000000e+00> : vector<2x128xf32>
    %20 = tpu.matmul %19, %1, %cst {dimension_numbers = #tpu.dot_dimension_numbers<[1], [0], [0], [1], [0, 0, 1, 1], [], []>} : vector<2x256xf32>, vector<256x128xf32>, vector<2x128xf32> -> vector<2x128xf32>
    %c0_3 = arith.constant 0 : index
    %c0_4 = arith.constant 0 : index
    %21 = vector.load %arg3[%c0_3, %c0_4] : memref<2x128xf32, #tpu.memory_space<vmem>>, vector<2x128xf32>
    tpu.vector_store %arg3[%c0_3, %c0_4], %20 {strides = array<i32>} : memref<2x128xf32, #tpu.memory_space<vmem>>, vector<2x128xf32>,
    return
  }
  func.func @transform_0(%arg0: i32) -> (i32, i32) {
    %c0_i32 = arith.constant 0 : i32
    %c0_i32_0 = arith.constant 0 : i32
    return %arg0, %c0_i32 : i32, i32
  }
  func.func @transform_1(%arg0: i32) -> (i32, i32) {
    %c0_i32 = arith.constant 0 : i32
    %c0_i32_0 = arith.constant 0 : i32
    %c0_i32_1 = arith.constant 0 : i32
    return %c0_i32, %c0_i32_0 : i32, i32
  }
  func.func @transform_2(%arg0: i32) -> (i32, i32) {
    %c0_i32 = arith.constant 0 : i32
    %c0_i32_0 = arith.constant 0 : i32
    return %arg0, %c0_i32 : i32, i32
  }
}

</mosaic_0001>

<bundles_post_ra>
// kernel: tpu_custom_call.1
= control target key start
LH: loop header
LB: loop body
LE: loop exit
PB: predicated region body
PF: predicated region fallthrough
CT: control target
= control target key end

     0   :  { %7 = vsyncpa [#allocation3], 0  ;;  %s417_s0 = inlined_call_operand.hbm [shape: s32[2,4], index: 0, kind: input, shape index: {}]   ;;  %s418_s1 = inlined_call_operand.hbm [shape: f32[256,128], index: 1, kind: input, shape index: {}]   ;;  %s419_s2 = inlined_call_operand.hbm [shape: f32[2,128], index: 2, kind: output, shape index: {}]  }
   0x1   :  { %8 = vsyncpa [#allocation6], 0 }
   0x2   :  { %9 = vsyncpa [#allocation4], 0  ;;  %s349_s9 = smov [#allocation2]   ;;  %s350_s11 = smov [#allocation5]  }
   0x3   :  { %s16_s10 = sshll.u32 %s349_s9, 4  ;;  %s25_s12 = sshll.u32 %s350_s11, 4  ;;  %s17_s10 = int_to_ptr.vmem [resolvable:$true] %s16_s10  ;;  %s374_s12 = int_to_ptr.vmem [resolvable:$true] %s25_s12 }
   0x4   :  { %s277_s15 = scalar_lea.hbm %s417_s0, 32 }
   0x5   :  { %p278_p0 = scmp.ne.s32.totalorder %s417_s0, %s277_s15  ;;  %p281_p1 = scmp.lt.u32.totalorder %s277_s15, %s417_s0 }
   0x7   :  { %p283_p2 = pnand %p281_p1, %p278_p0 }
   0x9   :  { %286 = shalt.err (!%p283_p2)
}
   0xa   :  { %s287_s20 = scalar_lea.vmem %s17_s10, 32  ;;  %p292_p4 = scmp.lt.s32.totalorder %s17_s10, %s17_s10 }
   0xb   :  { %p288_p3 = scmp.ne.s32.totalorder %s17_s10, %s287_s20  ;;  %p293_p5 = scmp.lt.s32.totalorder %s287_s20, %s287_s20 }
   0xd   :  { %p294_p6 = por %p293_p5, %p292_p4 }
   0xf   :  { %p295_p7 = pnand %p294_p6, %p288_p3 }
  0x11   :  { %298 = shalt.err (!%p295_p7)
}
  0x12   :  { %19 = dma.hbm_to_vmem [thread:$0]  %s417_s0, 32, %s17_s10, [#allocation3]  }
  0x13   :  { %s299_s25 = scalar_lea.hbm %s418_s1, 4096 }
  0x14   :  { %p300_p8 = scmp.ne.s32.totalorder %s418_s1, %s299_s25  ;;  %p303_p9 = scmp.lt.u32.totalorder %s299_s25, %s418_s1 }
  0x16   :  { %p305_p10 = pnand %p303_p9, %p300_p8 }
  0x18   :  { %308 = shalt.err (!%p305_p10)
}
  0x19   :  { %s309_s30 = scalar_lea.vmem %s374_s12, 4096  ;;  %p314_p12 = scmp.lt.s32.totalorder %s374_s12, %s374_s12 }
  0x1a   :  { %p310_p11 = scmp.ne.s32.totalorder %s374_s12, %s309_s30  ;;  %p315_p13 = scmp.lt.s32.totalorder %s309_s30, %s309_s30 }
  0x1c   :  { %p316_p0 = por %p315_p13, %p314_p12 }
  0x1e   :  { %p317_p1 = pnand %p316_p0, %p310_p11 }
  0x20   :  { %320 = shalt.err (!%p317_p1)
}
  0x21   :  { %s351_s0 = smov 128   ;;  %s352_s3 = smov 8  }
  0x22   :  { %31 = dma.hbm_to_vmem [thread:$0]  %s418_s1, 4096, %s374_s12, [#allocation6], %s351_s0, %s351_s0, %s352_s3  }
  0x23   :  { %343 = dma.done.wait [#allocation3], 32  }
  0x24   :  { %344 = vsyncadd [#allocation3], 4294967264 }
  0x25   :  { %345 = dma.done.wait [#allocation6], 4096  }
  0x26   :  { %346 = vsyncadd [#allocation6], 4294963200  ;;  %v353_v0 = vmov 0   ;;  %v354_v1 = vmov 2   ;;  %v38_v2 = vld [vmem:[#allocation2] sm:$0x3]  ;;  %v71_v53 = vlaneseq }
  0x27   :  { %272 = vset.pattern.permute.xlu0 %v353_v0  ;;  %274 = vset.pattern.permute.xlu1 %v354_v1  ;;  %v55_v3 = vld [vmem:[#allocation5 + $0x80] sm:$0xff]  ;;  %v56_v4 = vld [vmem:[#allocation5 + $0x88] sm:$0xff]  ;;  %v57_v8 = vld [vmem:[#allocation5 + $0x90] sm:$0xff]  ;;  %v355_v17 = vmov 1   ;;  %v356_v18 = vmov 3   ;;  %v357_v60 = vmov 1.0  }
  0x28   :  { %75 = vperm.xlu0 %272, %v38_v2   ;;  %87 = vperm.xlu1 %274, %v38_v2   ;;  %v230_v5 = vpack.c.bf16 %v56_v4, %v55_v3  ;;  %v39_v6 = vld [vmem:[#allocation5] sm:$0xff]  ;;  %v40_v7 = vld [vmem:[#allocation5 + $0x8] sm:$0xff]  ;;  %v58_v10 = vld [vmem:[#allocation5 + $0x98] sm:$0xff]  ;;  %v72_v54 = vand.u32 127, %v71_v53  ;;  %s358_s1 = smov [#allocation7]  }
  0x29   :  { %v232_v9 = vpack.c.bf16 %v40_v7, %v39_v6  ;;  %v41_v11 = vld [vmem:[#allocation5 + $0x10] sm:$0xff]  ;;  %v42_v12 = vld [vmem:[#allocation5 + $0x18] sm:$0xff]  ;;  %v234_v13 = vpack.c.bf16 %v58_v10, %v57_v8  ;;  %v59_v14 = vld [vmem:[#allocation5 + $0xa0] sm:$0xff]  ;;  %s181_s6 = sshll.u32 %s358_s1, 4  ;;  %s182_s6 = int_to_ptr.vmem [resolvable:$true] %s181_s6 }
  0x2a   :  { %231 = vmatprep.subr.bf16.mxu0 %v230_v5  ;;  %v60_v15 = vld [vmem:[#allocation5 + $0xa8] sm:$0xff]  ;;  %v236_v16 = vpack.c.bf16 %v42_v12, %v41_v11  ;;  %v43_v20 = vld [vmem:[#allocation5 + $0x20] sm:$0xff]  ;;  %v61_v22 = vld [vmem:[#allocation5 + $0xb0] sm:$0xff]  ;;  %v73_v57 = vadd.s32 128, %v72_v54  ;;  %s321_s7 = scalar_lea.vmem %s182_s6, 32  ;;  %p326_p3 = scmp.lt.s32.totalorder %s182_s6, %s182_s6 }
  0x2b   :  { %233 = vmatpush3.bf16.msra.mxu0 %v232_v9  ;;  %v238_v19 = vpack.c.bf16 %v60_v15, %v59_v14  ;;  %v44_v21 = vld [vmem:[#allocation5 + $0x28] sm:$0xff]  ;;  %v62_v23 = vld [vmem:[#allocation5 + $0xb8] sm:$0xff]  ;;  %v45_v26 = vld [vmem:[#allocation5 + $0x30] sm:$0xff]  ;;  %p322_p2 = scmp.ne.s32.totalorder %s182_s6, %s321_s7  ;;  %p327_p4 = scmp.lt.s32.totalorder %s321_s7, %s321_s7 }
  0x2c   :  { %273 = vset.pattern.permute.xlu0 %v355_v17  ;;  %275 = vset.pattern.permute.xlu1 %v356_v18  ;;  %v240_v24 = vpack.c.bf16 %v44_v21, %v43_v20  ;;  %v242_v25 = vpack.c.bf16 %v62_v23, %v61_v22  ;;  %v46_v27 = vld [vmem:[#allocation5 + $0x38] sm:$0xff]  ;;  %v63_v28 = vld [vmem:[#allocation5 + $0xc0] sm:$0xff]  ;;  %v64_v29 = vld [vmem:[#allocation5 + $0xc8] sm:$0xff] }
  0x2d   :  { %80 = vperm.xlu0 %273, %v38_v2   ;;  %94 = vperm.xlu1 %275, %v38_v2   ;;  %v244_v30 = vpack.c.bf16 %v46_v27, %v45_v26  ;;  %v246_v31 = vpack.c.bf16 %v64_v29, %v63_v28  ;;  %v47_v32 = vld [vmem:[#allocation5 + $0x40] sm:$0xff]  ;;  %v48_v33 = vld [vmem:[#allocation5 + $0x48] sm:$0xff]  ;;  %v65_v34 = vld [vmem:[#allocation5 + $0xd0] sm:$0xff]  ;;  %p328_p5 = por %p327_p4, %p326_p3 }
  0x2e   :  { %235 = vmatprep.subr.bf16.mxu0 %v234_v13  ;;  %v66_v35 = vld [vmem:[#allocation5 + $0xd8] sm:$0xff]  ;;  %v248_v36 = vpack.c.bf16 %v48_v33, %v47_v32  ;;  %v49_v38 = vld [vmem:[#allocation5 + $0x50] sm:$0xff]  ;;  %v67_v40 = vld [vmem:[#allocation5 + $0xe0] sm:$0xff] }
  0x2f   :  { %237 = vmatpush3.bf16.msra.mxu0 %v236_v16  ;;  %v250_v37 = vpack.c.bf16 %v66_v35, %v65_v34  ;;  %v50_v39 = vld [vmem:[#allocation5 + $0x58] sm:$0xff]  ;;  %v68_v41 = vld [vmem:[#allocation5 + $0xe8] sm:$0xff]  ;;  %v51_v44 = vld [vmem:[#allocation5 + $0x60] sm:$0xff]  ;;  %p329_p6 = pnand %p328_p5, %p322_p2 }
  0x30   :  { %239 = vmatprep.subr.bf16.mxu0 %v238_v19  ;;  %v252_v42 = vpack.c.bf16 %v50_v39, %v49_v38  ;;  %v254_v43 = vpack.c.bf16 %v68_v41, %v67_v40  ;;  %v52_v45 = vld [vmem:[#allocation5 + $0x68] sm:$0xff]  ;;  %v69_v46 = vld [vmem:[#allocation5 + $0xf0] sm:$0xff]  ;;  %v70_v47 = vld [vmem:[#allocation5 + $0xf8] sm:$0xff] }
  0x31   :  { %276 = vset.pattern.permute.xlu0 %v356_v18  ;;  %v256_v48 = vpack.c.bf16 %v52_v45, %v51_v44  ;;  %v258_v49 = vpack.c.bf16 %v70_v47, %v69_v46  ;;  %v53_v50 = vld [vmem:[#allocation5 + $0x70] sm:$0xff]  ;;  %v54_v51 = vld [vmem:[#allocation5 + $0x78] sm:$0xff] }
  0x32   :  { %v260_v52 = vpack.c.bf16 %v54_v51, %v53_v50 }
  0x33   :  { %241 = vmatpush3.bf16.msra.mxu0 %v240_v24 }
  0x34   :  { %243 = vmatprep.subr.bf16.mxu0 %v242_v25 }
  0x37   :  { %245 = vmatpush3.bf16.msra.mxu0 %v244_v30 }
  0x38   :  { %247 = vmatprep.subr.bf16.mxu0 %v246_v31 }
  0x3b   :  { %249 = vmatpush3.bf16.msra.mxu0 %v248_v36 }
  0x3c   :  { %251 = vmatprep.subr.bf16.mxu0 %v250_v37 }
  0x3f   :  { %253 = vmatpush3.bf16.msra.mxu0 %v252_v42 }
  0x40   :  { %255 = vmatprep.subr.bf16.mxu0 %v254_v43 }
  0x43   :  { %257 = vmatpush3.bf16.msra.mxu0 %v256_v48 }
  0x44   :  { %259 = vmatprep.subr.bf16.mxu0 %v258_v49 }
  0x47   :  { %261 = vmatpush3.bf16.msra.mxu0 %v260_v52 }
  0xa7   :  { %v76_v55 = vpop.permute.xlu0 %75  ;;  %v88_v56 = vpop.permute.xlu1 %87 }
  0xa8   :  { %vm77_vm0 = vcmp.eq.s32.totalorder %v76_v55, %v72_v54  ;;  %vm78_vm3 = vcmp.eq.s32.totalorder %v76_v55, %v73_v57  ;;  %vm89_vm6 = vcmp.eq.s32.totalorder %v88_v56, %v72_v54  ;;  %vm90_vm10 = vcmp.eq.s32.totalorder %v88_v56, %v73_v57 }
  0xac   :  { %v81_v58 = vpop.permute.xlu0 %80  ;;  %v95_v59 = vpop.permute.xlu1 %94 }
  0xad   :  { %vm82_vm1 = vcmp.eq.s32.totalorder %v81_v58, %v72_v54  ;;  %vm83_vm2 = vcmp.eq.s32.totalorder %v81_v58, %v73_v57  ;;  %vm96_vm5 = vcmp.eq.s32.totalorder %v95_v59, %v72_v54  ;;  %vm97_vm9 = vcmp.eq.s32.totalorder %v95_v59, %v73_v57 }
  0xae   :  { %vm84_vm4 = vmor %vm77_vm0, %vm82_vm1 }
  0xaf   :  { %vm85_vm7 = vmor %vm78_vm3, %vm83_vm2 }
  0xb0   :  { %vm91_vm8 = vmor %vm84_vm4, %vm89_vm6 }
  0xb1   :  { %vm98_vm11 = vmor %vm91_vm8, %vm96_vm5 }
  0xb2   :  { %vm92_vm12 = vmor %vm85_vm7, %vm90_vm10 }
  0xb3   :  { %vm99_vm13 = vmor %vm92_vm12, %vm97_vm9 }
  0xb4   :  { %193 = vmatprep.mubr.msk.f32.mxu0 %vm99_vm13, %v357_v60 }
  0xb5   :  { %194 = vmatmul.mubr.msk.f32.vlgmr.msra.gmra.mrb[0].mxu0 %vm98_vm11, %v357_v60 }
 0x188   :  { %v227_v61 = vpop.f32.mrb[0].mxu0 }
 0x189   :  { %v228_v62 = vpop.f32.mrb[1].mxu0 }
 0x18a   :  { %v229_v63 = vadd.f32 %v228_v62, %v227_v61 }
 0x18c   :  { %174 = vst [vmem:[#allocation7] sm:$0x3] %v229_v63 }
 0x18d   :  { %332 = shalt.err (!%p329_p6)
}
 0x18e   :  { %s333_s10 = scalar_lea.hbm %s419_s2, 32 }
 0x18f   :  { %p334_p7 = scmp.ne.s32.totalorder %s419_s2, %s333_s10  ;;  %p337_p8 = scmp.lt.u32.totalorder %s333_s10, %s419_s2 }
 0x191   :  { %p339_p9 = pnand %p337_p8, %p334_p7 }
 0x193   :  { %342 = shalt.err (!%p339_p9)
}
 0x194   :  { %184 = dma.vmem_to_hbm [thread:$0]  %s182_s6, 32, %s419_s2, [#allocation4]  }
 0x195   :  { %347 = dma.done.wait [#allocation4], 32  }
 0x196   :  { %348 = vsyncadd [#allocation4], 4294967264 }
 0x197   :  { %188 = vsyncpa [#allocation3], 1 }
 0x198   :  { %189 = vsyncpa [#allocation6], 1 }
 0x199   :  { %190 = vsyncpa [#allocation4], 1 }

</bundles_post_ra>
